<compile_context>
chip_gen: v7x
topology: tpu7x:2x2x1
jax: 0.10.0
libtpu: 0.0.40
codegen_flags: <defaults>
</compile_context>

<pallas_src>
import math

import jax
import jax.numpy as jnp
from jax import lax
from jax.experimental import pallas as pl
from jax.experimental.pallas import tpu as pltpu


# ----------------------------------------------------------------------------- helpers
def _round_up(x: int, m: int) -> int:
    return ((x + m - 1) // m) * m


def _pick_tile(n: int, target: int) -> int:
    """Largest t <= target with t % 8 == 0 and n % t == 0; falls back to full n."""
    if n % 8 != 0:
        return n
    t = min(target, n)
    t -= t % 8
    while t >= 8:
        if n % t == 0:
            return t
        t -= 8
    return n


def _pick_lane_tile(n: int, target: int = 512) -> int:
    """Largest multiple of 128 dividing n (<= target); full n if n % 128 != 0."""
    if n % 128 != 0 or n <= target:
        return n
    t = (target // 128) * 128
    while t >= 128:
        if n % t == 0:
            return t
        t -= 128
    return n


def _pad_seq(x, s_pad: int):
    B, S, D = x.shape
    if s_pad == S:
        return x
    return jnp.pad(x, ((0, 0), (0, s_pad - S), (0, 0)))


# ------------------------------------------------ fused Q/K/V projection + head split
def _qkv_proj_kernel(x_ref, w_ref, b_ref, o_ref, acc_ref):
    # x_ref: (tr, tkk) f32   w_ref: (1, tkk, hd) bf16   b_ref: (1, 1, hd) f32
    # o_ref: (1, tr, hd) bf16   acc_ref: (tr, hd) f32
    kk = pl.program_id(2)

    @pl.when(kk == 0)
    def _():
        acc_ref[...] = jnp.zeros_like(acc_ref)

    x = x_ref[...].astype(jnp.bfloat16)  # in-kernel VPU cast; no wrapper HBM cast pass
    acc_ref[...] += jnp.dot(x, w_ref[0], preferred_element_type=jnp.float32)

    @pl.when(kk == pl.num_programs(2) - 1)
    def _():
        o_ref[0] = (acc_ref[...] + b_ref[0]).astype(o_ref.dtype)


def _qkv_projection(x2d, w, b, *, row_target: int = 256, k_target: int = 512):
    """(R, Din) f32 @ head-major (H, Din, hd) bf16 + bias -> (H, R, hd) bf16."""
    R, Din = x2d.shape
    H, _, hd = w.shape
    tr = _pick_tile(R, row_target)
    tkk = _pick_lane_tile(Din, k_target)

    flops = 2 * R * Din * H * hd
    bytes_accessed = R * Din * 4 + H * Din * hd * 2 + H * R * hd * 2 + H * hd * 4

    return pl.pallas_call(
        _qkv_proj_kernel,
        out_shape=jax.ShapeDtypeStruct((H, R, hd), jnp.bfloat16),
        grid_spec=pltpu.PrefetchScalarGridSpec(
            num_scalar_prefetch=0,
            grid=(R // tr, H, Din // tkk),
            in_specs=[
                pl.BlockSpec((tr, tkk), lambda i, h, kk: (i, kk)),
                pl.BlockSpec((1, tkk, hd), lambda i, h, kk: (h, kk, 0)),
                pl.BlockSpec((1, 1, hd), lambda i, h, kk: (h, 0, 0)),
            ],
            out_specs=pl.BlockSpec((1, tr, hd), lambda i, h, kk: (h, i, 0)),
            scratch_shapes=[pltpu.VMEM((tr, hd), jnp.float32)],
        ),
        compiler_params=pltpu.CompilerParams(
            dimension_semantics=("parallel", "parallel", "arbitrary")
        ),
        cost_estimate=pl.CostEstimate(
            flops=flops, transcendentals=0, bytes_accessed=bytes_accessed
        ),
    )(x2d, w, b)


# ------------------------------------------------------------- flash attention kernel
def _make_attention_kernel(skv_actual: int, skv_pad: int, tk: int, hd: int):
    nkv = skv_pad // tk
    need_mask = skv_pad != skv_actual

    def kernel(q_ref, k_ref, v_ref, o_ref):
        # q_ref: (1, 1, tq, hd) bf16 (scale already folded into W_q)
        # k_ref/v_ref: (1, 1, skv_pad, hd) bf16, resident across q tiles of this (b, h)
        tq = q_ref.shape[2]
        q = q_ref[0, 0]

        def step(j, carry):
            m_prev, l_prev, acc_prev = carry
            off = pl.multiple_of(j * tk, tk)
            kblk = k_ref[0, 0, pl.ds(off, tk), :]   # (tk, hd)
            vblk = v_ref[0, 0, pl.ds(off, tk), :]
            # q . k contracted over hd (no explicit transpose / XLU relayout).
            s = lax.dot_general(
                q, kblk, (((1,), (1,)), ((), ())), preferred_element_type=jnp.float32
            )  # (tq, tk) f32
            if need_mask:
                col = lax.broadcasted_iota(jnp.int32, (tq, tk), 1) + off
                s = jnp.where(col < skv_actual, s, -1e30)
            m_new = jnp.maximum(m_prev, jnp.max(s, axis=-1, keepdims=True))
            alpha = jnp.exp(m_prev - m_new)
            p = jnp.exp(s - m_new)
            l_new = alpha * l_prev + jnp.sum(p, axis=-1, keepdims=True)
            acc_new = alpha * acc_prev + jnp.dot(
                p.astype(vblk.dtype), vblk, preferred_element_type=jnp.float32
            )
            return m_new, l_new, acc_new

        init = (
            jnp.full((tq, 1), -jnp.inf, jnp.float32),
            jnp.zeros((tq, 1), jnp.float32),
            jnp.zeros((tq, hd), jnp.float32),
        )
        m, l, acc = lax.fori_loop(0, nkv, step, init, unroll=nkv <= 8)
        inv = pl.reciprocal(l, approx=True)  # EUP slot; ~1e-3 rel err, within tolerance
        o_ref[0, 0] = (acc * inv).astype(o_ref.dtype)

    return kernel


def _flash_attention(q4, k4, v4, *, skv_actual: int, tq_target: int = 128,
                     tk_target: int = 256):
    """q4: (H, B, Sq_p, hd), k4/v4: (H, B, Skv_p, hd) bf16 -> (H, B, Sq_p, hd) bf16."""
    H, B, Sq_p, hd = q4.shape
    _, _, Skv_p, _ = k4.shape
    tq = _pick_tile(Sq_p, tq_target)
    # tk is only the in-kernel chunk width (K/V stay resident).  256 suits the
    # 256-wide MXU on v6e/v7x; 128 already saturates v5e -- either is correct.
    tk = _pick_tile(Skv_p, tk_target)
    kernel = _make_attention_kernel(skv_actual, Skv_p, tk, hd)

    flops = 4 * B * H * Sq_p * Skv_p * hd            # QK^T + P@V
    transcendentals = B * H * Sq_p * Skv_p           # exp
    bytes_accessed = 2 * (2 * B * H * Sq_p * hd + 2 * B * H * Skv_p * hd)

    return pl.pallas_call(
        kernel,
        out_shape=jax.ShapeDtypeStruct((H, B, Sq_p, hd), jnp.bfloat16),
        grid_spec=pltpu.PrefetchScalarGridSpec(
            num_scalar_prefetch=0,
            grid=(B, H, Sq_p // tq),
            in_specs=[
                pl.BlockSpec((1, 1, tq, hd), lambda b, h, qi: (h, b, qi, 0)),
                # K/V block index ignores qi -> kept resident across q tiles (no re-DMA).
                pl.BlockSpec((1, 1, Skv_p, hd), lambda b, h, qi: (h, b, 0, 0)),
                pl.BlockSpec((1, 1, Skv_p, hd), lambda b, h, qi: (h, b, 0, 0)),
            ],
            out_specs=pl.BlockSpec((1, 1, tq, hd), lambda b, h, qi: (h, b, qi, 0)),
        ),
        compiler_params=pltpu.CompilerParams(
            dimension_semantics=("parallel", "parallel", "parallel")
        ),
        cost_estimate=pl.CostEstimate(
            flops=flops, transcendentals=transcendentals, bytes_accessed=bytes_accessed
        ),
    )(q4, k4, v4)


# ----------------------------------------------- output projection (head-merge fused)
def _o_proj_kernel(a_ref, w_ref, b_ref, o_ref, acc_ref):
    # a_ref: (1, tr, hd) bf16   w_ref: (1, hd, tn) bf16   b_ref: (1, tn) f32
    # o_ref: (tr, tn) f32       acc_ref: (tr, tn) f32
    h = pl.program_id(2)

    @pl.when(h == 0)
    def _():
        acc_ref[...] = jnp.zeros_like(acc_ref)

    acc_ref[...] += jnp.dot(a_ref[0], w_ref[0], preferred_element_type=jnp.float32)

    @pl.when(h == pl.num_programs(2) - 1)
    def _():
        o_ref[...] = (acc_ref[...] + b_ref[...]).astype(o_ref.dtype)


def _o_projection(attn2d, wo, bo, *, row_target: int = 256, n_target: int = 512):
    """sum_h attn[h] @ wo[h] + bo : (H, R, hd) bf16 -> (R, E) f32 (head merge fused)."""
    H, R, hd = attn2d.shape
    E = wo.shape[2]
    tr = _pick_tile(R, row_target)
    tn = _pick_lane_tile(E, n_target)

    flops = 2 * R * H * hd * E
    bytes_accessed = H * R * hd * 2 + H * hd * E * 2 + R * E * 4 + E * 4

    return pl.pallas_call(
        _o_proj_kernel,
        out_shape=jax.ShapeDtypeStruct((R, E), jnp.float32),
        grid_spec=pltpu.PrefetchScalarGridSpec(
            num_scalar_prefetch=0,
            grid=(R // tr, E // tn, H),
            in_specs=[
                pl.BlockSpec((1, tr, hd), lambda i, j, h: (h, i, 0)),
                pl.BlockSpec((1, hd, tn), lambda i, j, h: (h, 0, j)),
                pl.BlockSpec((1, tn), lambda i, j, h: (0, j)),
            ],
            out_specs=pl.BlockSpec((tr, tn), lambda i, j, h: (i, j)),
            scratch_shapes=[pltpu.VMEM((tr, tn), jnp.float32)],
        ),
        compiler_params=pltpu.CompilerParams(
            dimension_semantics=("parallel", "parallel", "arbitrary")
        ),
        cost_estimate=pl.CostEstimate(
            flops=flops, transcendentals=0, bytes_accessed=bytes_accessed
        ),
    )(attn2d, wo, bo)


# ------------------------------------------------------------------------- public API
def prepare_params(params, num_heads: int):
    """One-time conversion of PyTorch-layout params into kernel-friendly layout.

    * Q/K/V weights -> head-major (H, Din, hd) bf16 (stored in bf16 persistently,
      no per-call cast); the 1/sqrt(head_dim) softmax scale is folded into W_q / b_q.
    * O weight -> (H, hd, E) bf16 so the head merge becomes the reduction grid axis of
      the output-projection GEMM (no wrapper-side activation transpose anywhere).
    * Biases stay f32 (added onto the f32 accumulator inside the kernels).
    """
    wq, bq, wk, bk, wv, bv, wo, bo = params
    Din, E = wq.shape
    H = num_heads
    hd = E // H
    scale = 1.0 / math.sqrt(hd)

    def w_head_major(w, s=1.0):
        return ((w * s).reshape(Din, H, hd).transpose(1, 0, 2)).astype(jnp.bfloat16)

    def b_head_major(b, s=1.0):
        return ((b * s).reshape(1, H, hd).transpose(1, 0, 2)).astype(jnp.float32)

    return dict(
        wq=w_head_major(wq, scale), bq=b_head_major(bq, scale),
        wk=w_head_major(wk), bk=b_head_major(bk),
        wv=w_head_major(wv), bv=b_head_major(bv),
        wo=wo.reshape(H, hd, E).astype(jnp.bfloat16),
        bo=bo.astype(jnp.float32),
    )


def multihead_attention(q, k, v, prepped, *, num_heads: int):
    """q: (B, Sq, Din), k/v: (B, Skv, Din) f32. Returns (B, Sq, embed_dim) f32."""
    B, Sq, Din = q.shape
    _, Skv, _ = k.shape
    H = num_heads
    hd = prepped["wq"].shape[2]
    E = H * hd

    # Pad sequences to a multiple of 8 (padded keys are masked inside the kernel,
    # padded query rows are sliced away at the end).  No-op for aligned shapes.
    Sq_p = _round_up(Sq, 8)
    Skv_p = _round_up(Skv, 8)
    q = _pad_seq(q, Sq_p)
    k = _pad_seq(k, Skv_p)
    v = _pad_seq(v, Skv_p)

    # Fused projection + head split: (B*S, Din) f32 -> (H, B*S, hd) bf16.
    qp = _qkv_projection(q.reshape(B * Sq_p, Din), prepped["wq"], prepped["bq"])
    kp = _qkv_projection(k.reshape(B * Skv_p, Din), prepped["wk"], prepped["bk"])
    vp = _qkv_projection(v.reshape(B * Skv_p, Din), prepped["wv"], prepped["bv"])

    # Free reshapes only -- no transpose passes.
    q4 = qp.reshape(H, B, Sq_p, hd)
    k4 = kp.reshape(H, B, Skv_p, hd)
    v4 = vp.reshape(H, B, Skv_p, hd)

    attn = _flash_attention(q4, k4, v4, skv_actual=Skv)       # (H, B, Sq_p, hd) bf16

    out = _o_projection(attn.reshape(H, B * Sq_p, hd), prepped["wo"], prepped["bo"])
    out = out.reshape(B, Sq_p, E)
    if Sq_p != Sq:
        out = out[:, :Sq, :]
    return out


# --------------------------------------------------------------------- init & reference
def _xavier_uniform(key, fan_in, fan_out):
    # Matches torch.nn.init.xavier_uniform_; stored as (in, out) for x @ W.
    bound = math.sqrt(6.0 / (fan_in + fan_out))
    return jax.random.uniform(key, (fan_in, fan_out), jnp.float32, -bound, bound)


def _linear_bias(key, fan_in, fan_out):
    # nn.Linear default bias init: U(-1/sqrt(fan_in), 1/sqrt(fan_in)); shape (1, out).
    bound = 1.0 / math.sqrt(fan_in)
    return jax.random.uniform(key, (1, fan_out), jnp.float32, -bound, bound)


def init_params(key, input_dim, embed_dim):
    ks = jax.random.split(key, 8)
    wq = _xavier_uniform(ks[0], input_dim, embed_dim)
    bq = _linear_bias(ks[1], input_dim, embed_dim)
    wk = _xavier_uniform(ks[2], input_dim, embed_dim)
    bk = _linear_bias(ks[3], input_dim, embed_dim)
    wv = _xavier_uniform(ks[4], input_dim, embed_dim)
    bv = _linear_bias(ks[5], input_dim, embed_dim)
    wo = _xavier_uniform(ks[6], embed_dim, embed_dim)
    bo = _linear_bias(ks[7], embed_dim, embed_dim)
    return (wq, bq, wk, bk, wv, bv, wo, bo)


def reference_mha(q, k, v, params, *, num_heads: int):
    """Pure-JAX f32 reference mirroring the PyTorch forward."""
    wq, bq, wk, bk, wv, bv, wo, bo = params
    B, Sq, _ = q.shape
    _, Skv, _ = k.shape
    E = wq.shape[1]
    hd = E // num_heads

    qp = q @ wq + bq
    kp = k @ wk + bk
    vp = v @ wv + bv
    qp = qp.reshape(B, Sq, num_heads, hd).transpose(0, 2, 1, 3)
    kp = kp.reshape(B, Skv, num_heads, hd).transpose(0, 2, 1, 3)
    vp = vp.reshape(B, Skv, num_heads, hd).transpose(0, 2, 1, 3)
    logits = jnp.einsum("bhqd,bhkd->bhqk", qp, kp) / math.sqrt(hd)
    attn = jax.nn.softmax(logits, axis=-1)
    vals = jnp.einsum("bhqk,bhkd->bhqd", attn, vp)
    vals = vals.transpose(0, 2, 1, 3).reshape(B, Sq, E)
    return vals @ wo + bo


if __name__ == "__main__":
    # Small shapes consistent with the module's forward signature.
    batch = 2
    seq_q = 8
    seq_kv = 8
    input_dim = 16
    embed_dim = 32
    num_heads = 4

    key = jax.random.PRNGKey(0)
    k_q, k_k, k_v, k_p = jax.random.split(key, 4)
    q = jax.random.normal(k_q, (batch, seq_q, input_dim), jnp.float32)
    k = jax.random.normal(k_k, (batch, seq_kv, input_dim), jnp.float32)
    v = jax.random.normal(k_v, (batch, seq_kv, input_dim), jnp.float32)
    params = init_params(k_p, input_dim, embed_dim)
    prepped = prepare_params(params, num_heads)   # one-time bf16 / head-major weight prep

    fwd = jax.jit(lambda q, k, v: multihead_attention(q, k, v, prepped,
                                                      num_heads=num_heads))
    out = fwd(q, k, v)
    out = jax.block_until_ready(out)

    ref = reference_mha(q, k, v, params, num_heads=num_heads)
    assert out.shape == (batch, seq_q, embed_dim)
    # bf16 MXU inputs (accuracy/perf trade) -> looser tolerance than pure-f32 PyTorch.
    assert jnp.allclose(out, ref, atol=5e-2, rtol=5e-2)

    print("KERNEL_OK")
</pallas_src>

<mosaic_0001>
module attributes {stable_mosaic.version = 11 : i64} {
  func.func @_o_proj_kernel(%arg0: i32, %arg1: i32, %arg2: i32, %arg3: memref<1x16x8xbf16, #tpu.memory_space<vmem>>, %arg4: memref<1x8x32xbf16, #tpu.memory_space<vmem>>, %arg5: memref<1x32xf32, #tpu.memory_space<vmem>>, %arg6: memref<16x32xf32, #tpu.memory_space<vmem>>, %arg7: memref<16x32xf32, #tpu.memory_space<vmem>>) attributes {dimension_semantics = [#tpu.dimension_semantics<parallel>, #tpu.dimension_semantics<parallel>, #tpu.dimension_semantics<arbitrary>], iteration_bounds = array<i64: 1, 1, 4>, scalar_prefetch = 0 : i64, scratch_operands = 1 : i64, tpu.core_type = #tpu.core_type<tc>, window_params = [{transform_indices = @transform_0, window_bounds = array<i64: 1, 16, 8>}, {transform_indices = @transform_1, window_bounds = array<i64: 1, 8, 32>}, {transform_indices = @transform_2, window_bounds = array<i64: 1, 32>}, {transform_indices = @transform_3, window_bounds = array<i64: 16, 32>}]} {
    %c0_i32 = arith.constant 0 : i32
    %0 = arith.cmpi eq, %arg2, %c0_i32 : i32
    %1 = arith.extui %0 : i1 to i32
    %c0_i32_0 = arith.constant 0 : i32
    %2 = arith.cmpi ne, %1, %c0_i32_0 : i32
    scf.if %2 {
      %cst_11 = arith.constant 0.000000e+00 : f32
      %14 = vector.broadcast %cst_11 : f32 to vector<16x32xf32>
      %c0_12 = arith.constant 0 : index
      %c0_13 = arith.constant 0 : index
      %15 = vector.load %arg7[%c0_12, %c0_13] : memref<16x32xf32, #tpu.memory_space<vmem>>, vector<16x32xf32>
      tpu.vector_store %arg7[%c0_12, %c0_13], %14 {strides = array<i32>} : memref<16x32xf32, #tpu.memory_space<vmem>>, vector<16x32xf32>,
    } else {
    }
    %c0 = arith.constant 0 : index
    %c0_1 = arith.constant 0 : index
    %3 = vector.load %arg7[%c0, %c0_1] : memref<16x32xf32, #tpu.memory_space<vmem>>, vector<16x32xf32>
    %c0_2 = arith.constant 0 : index
    %c0_3 = arith.constant 0 : index
    %c0_4 = arith.constant 0 : index
    %4 = vector.load %arg3[%c0_2, %c0_3, %c0_4] : memref<1x16x8xbf16, #tpu.memory_space<vmem>>, vector<1x16x8xbf16>
    %5 = vector.shape_cast %4 : vector<1x16x8xbf16> to vector<16x8xbf16>
    %c0_5 = arith.constant 0 : index
    %c0_6 = arith.constant 0 : index
    %c0_7 = arith.constant 0 : index
    %6 = vector.load %arg4[%c0_5, %c0_6, %c0_7] : memref<1x8x32xbf16, #tpu.memory_space<vmem>>, vector<1x8x32xbf16>
    %7 = vector.shape_cast %6 : vector<1x8x32xbf16> to vector<8x32xbf16>
    %cst = arith.constant dense<0.000000e+00> : vector<16x32xf32>
    %8 = tpu.matmul %5, %7, %cst {dimension_numbers = #tpu.dot_dimension_numbers<[1], [0], [0], [1], [0, 0, 1, 1], [], []>} : vector<16x8xbf16>, vector<8x32xbf16>, vector<16x32xf32> -> vector<16x32xf32>
    %9 = arith.addf %3, %8 : vector<16x32xf32>
    %c0_8 = arith.constant 0 : index
    %c0_9 = arith.constant 0 : index
    %10 = vector.load %arg7[%c0_8, %c0_9] : memref<16x32xf32, #tpu.memory_space<vmem>>, vector<16x32xf32>
    tpu.vector_store %arg7[%c0_8, %c0_9], %9 {strides = array<i32>} : memref<16x32xf32, #tpu.memory_space<vmem>>, vector<16x32xf32>,
    %c3_i32 = arith.constant 3 : i32
    %11 = arith.cmpi eq, %arg2, %c3_i32 : i32
    %12 = arith.extui %11 : i1 to i32
    %c0_i32_10 = arith.constant 0 : i32
    %13 = arith.cmpi ne, %12, %c0_i32_10 : i32
    scf.if %13 {
      %c0_11 = arith.constant 0 : index
      %c0_12 = arith.constant 0 : index
      %14 = vector.load %arg7[%c0_11, %c0_12] : memref<16x32xf32, #tpu.memory_space<vmem>>, vector<16x32xf32>
      %c0_13 = arith.constant 0 : index
      %c0_14 = arith.constant 0 : index
      %15 = vector.load %arg5[%c0_13, %c0_14] : memref<1x32xf32, #tpu.memory_space<vmem>>, vector<1x32xf32>
      %16 = vector.broadcast %15 : vector<1x32xf32> to vector<16x32xf32>
      %17 = arith.addf %14, %16 : vector<16x32xf32>
      %c0_15 = arith.constant 0 : index
      %c0_16 = arith.constant 0 : index
      %18 = vector.load %arg6[%c0_15, %c0_16] : memref<16x32xf32, #tpu.memory_space<vmem>>, vector<16x32xf32>
      tpu.vector_store %arg6[%c0_15, %c0_16], %17 {strides = array<i32>} : memref<16x32xf32, #tpu.memory_space<vmem>>, vector<16x32xf32>,
    } else {
    }
    return
  }
  func.func @transform_0(%arg0: i32, %arg1: i32, %arg2: i32) -> (i32, i32, i32) {
    %c0_i32 = arith.constant 0 : i32
    %c0_i32_0 = arith.constant 0 : i32
    return %arg2, %arg0, %c0_i32 : i32, i32, i32
  }
  func.func @transform_1(%arg0: i32, %arg1: i32, %arg2: i32) -> (i32, i32, i32) {
    %c0_i32 = arith.constant 0 : i32
    %c0_i32_0 = arith.constant 0 : i32
    return %arg2, %c0_i32, %arg1 : i32, i32, i32
  }
  func.func @transform_2(%arg0: i32, %arg1: i32, %arg2: i32) -> (i32, i32) {
    %c0_i32 = arith.constant 0 : i32
    %c0_i32_0 = arith.constant 0 : i32
    return %c0_i32, %arg1 : i32, i32
  }
  func.func @transform_3(%arg0: i32, %arg1: i32, %arg2: i32) -> (i32, i32) {
    %c0_i32 = arith.constant 0 : i32
    return %arg0, %arg1 : i32, i32
  }
}

module attributes {stable_mosaic.version = 11 : i64} {
  func.func @_qkv_proj_kernel(%arg0: i32, %arg1: i32, %arg2: i32, %arg3: memref<16x16xf32, #tpu.memory_space<vmem>>, %arg4: memref<1x16x8xbf16, #tpu.memory_space<vmem>>, %arg5: memref<1x1x8xf32, #tpu.memory_space<vmem>>, %arg6: memref<1x16x8xbf16, #tpu.memory_space<vmem>>, %arg7: memref<16x8xf32, #tpu.memory_space<vmem>>) attributes {dimension_semantics = [#tpu.dimension_semantics<parallel>, #tpu.dimension_semantics<parallel>, #tpu.dimension_semantics<arbitrary>], iteration_bounds = array<i64: 1, 4, 1>, scalar_prefetch = 0 : i64, scratch_operands = 1 : i64, tpu.core_type = #tpu.core_type<tc>, window_params = [{transform_indices = @transform_0, window_bounds = array<i64: 16, 16>}, {transform_indices = @transform_1, window_bounds = array<i64: 1, 16, 8>}, {transform_indices = @transform_2, window_bounds = array<i64: 1, 1, 8>}, {transform_indices = @transform_3, window_bounds = array<i64: 1, 16, 8>}]} {
    %c0_i32 = arith.constant 0 : i32
    %0 = arith.cmpi eq, %arg2, %c0_i32 : i32
    %1 = arith.extui %0 : i1 to i32
    %c0_i32_0 = arith.constant 0 : i32
    %2 = arith.cmpi ne, %1, %c0_i32_0 : i32
    scf.if %2 {
      %cst_11 = arith.constant 0.000000e+00 : f32
      %14 = vector.broadcast %cst_11 : f32 to vector<16x8xf32>
      %c0_12 = arith.constant 0 : index
      %c0_13 = arith.constant 0 : index
      %15 = vector.load %arg7[%c0_12, %c0_13] : memref<16x8xf32, #tpu.memory_space<vmem>>, vector<16x8xf32>
      tpu.vector_store %arg7[%c0_12, %c0_13], %14 {strides = array<i32>} : memref<16x8xf32, #tpu.memory_space<vmem>>, vector<16x8xf32>,
    } else {
    }
    %c0 = arith.constant 0 : index
    %c0_1 = arith.constant 0 : index
    %3 = vector.load %arg3[%c0, %c0_1] : memref<16x16xf32, #tpu.memory_space<vmem>>, vector<16x16xf32>
    %4 = arith.truncf %3 : vector<16x16xf32> to vector<16x16xbf16>
    %c0_2 = arith.constant 0 : index
    %c0_3 = arith.constant 0 : index
    %5 = vector.load %arg7[%c0_2, %c0_3] : memref<16x8xf32, #tpu.memory_space<vmem>>, vector<16x8xf32>
    %c0_4 = arith.constant 0 : index
    %c0_5 = arith.constant 0 : index
    %c0_6 = arith.constant 0 : index
    %6 = vector.load %arg4[%c0_4, %c0_5, %c0_6] : memref<1x16x8xbf16, #tpu.memory_space<vmem>>, vector<1x16x8xbf16>
    %7 = vector.shape_cast %6 : vector<1x16x8xbf16> to vector<16x8xbf16>
    %cst = arith.constant dense<0.000000e+00> : vector<16x8xf32>
    %8 = tpu.matmul %4, %7, %cst {dimension_numbers = #tpu.dot_dimension_numbers<[1], [0], [0], [1], [0, 0, 1, 1], [], []>} : vector<16x16xbf16>, vector<16x8xbf16>, vector<16x8xf32> -> vector<16x8xf32>
    %9 = arith.addf %5, %8 : vector<16x8xf32>
    %c0_7 = arith.constant 0 : index
    %c0_8 = arith.constant 0 : index
    %10 = vector.load %arg7[%c0_7, %c0_8] : memref<16x8xf32, #tpu.memory_space<vmem>>, vector<16x8xf32>
    tpu.vector_store %arg7[%c0_7, %c0_8], %9 {strides = array<i32>} : memref<16x8xf32, #tpu.memory_space<vmem>>, vector<16x8xf32>,
    %c0_i32_9 = arith.constant 0 : i32
    %11 = arith.cmpi eq, %arg2, %c0_i32_9 : i32
    %12 = arith.extui %11 : i1 to i32
    %c0_i32_10 = arith.constant 0 : i32
    %13 = arith.cmpi ne, %12, %c0_i32_10 : i32
    scf.if %13 {
      %c0_11 = arith.constant 0 : index
      %c0_12 = arith.constant 0 : index
      %14 = vector.load %arg7[%c0_11, %c0_12] : memref<16x8xf32, #tpu.memory_space<vmem>>, vector<16x8xf32>
      %c0_13 = arith.constant 0 : index
      %c0_14 = arith.constant 0 : index
      %c0_15 = arith.constant 0 : index
      %15 = vector.load %arg5[%c0_13, %c0_14, %c0_15] : memref<1x1x8xf32, #tpu.memory_space<vmem>>, vector<1x1x8xf32>
      %16 = vector.shape_cast %15 : vector<1x1x8xf32> to vector<1x8xf32>
      %17 = vector.broadcast %16 : vector<1x8xf32> to vector<16x8xf32>
      %18 = arith.addf %14, %17 : vector<16x8xf32>
      %19 = arith.truncf %18 : vector<16x8xf32> to vector<16x8xbf16>
      %c0_16 = arith.constant 0 : index
      %c0_17 = arith.constant 0 : index
      %c0_18 = arith.constant 0 : index
      %20 = vector.load %arg6[%c0_16, %c0_17, %c0_18] : memref<1x16x8xbf16, #tpu.memory_space<vmem>>, vector<1x16x8xbf16>
      %21 = vector.shape_cast %20 : vector<1x16x8xbf16> to vector<16x8xbf16>
      %22 = vector.shape_cast %19 : vector<16x8xbf16> to vector<1x16x8xbf16>
      tpu.vector_store %arg6[%c0_16, %c0_17, %c0_18], %22 {strides = array<i32>} : memref<1x16x8xbf16, #tpu.memory_space<vmem>>, vector<1x16x8xbf16>,
    } else {
    }
    return
  }
  func.func @transform_0(%arg0: i32, %arg1: i32, %arg2: i32) -> (i32, i32) {
    %c0_i32 = arith.constant 0 : i32
    return %arg0, %arg2 : i32, i32
  }
  func.func @transform_1(%arg0: i32, %arg1: i32, %arg2: i32) -> (i32, i32, i32) {
    %c0_i32 = arith.constant 0 : i32
    %c0_i32_0 = arith.constant 0 : i32
    return %arg1, %arg2, %c0_i32 : i32, i32, i32
  }
  func.func @transform_2(%arg0: i32, %arg1: i32, %arg2: i32) -> (i32, i32, i32) {
    %c0_i32 = arith.constant 0 : i32
    %c0_i32_0 = arith.constant 0 : i32
    %c0_i32_1 = arith.constant 0 : i32
    return %arg1, %c0_i32, %c0_i32_0 : i32, i32, i32
  }
  func.func @transform_3(%arg0: i32, %arg1: i32, %arg2: i32) -> (i32, i32, i32) {
    %c0_i32 = arith.constant 0 : i32
    %c0_i32_0 = arith.constant 0 : i32
    return %arg1, %arg0, %c0_i32 : i32, i32, i32
  }
}

module attributes {stable_mosaic.version = 11 : i64} {
  func.func @kernel(%arg0: i32, %arg1: i32, %arg2: i32, %arg3: memref<1x1x8x8xbf16, #tpu.memory_space<vmem>>, %arg4: memref<1x1x8x8xbf16, #tpu.memory_space<vmem>>, %arg5: memref<1x1x8x8xbf16, #tpu.memory_space<vmem>>, %arg6: memref<1x1x8x8xbf16, #tpu.memory_space<vmem>>) attributes {dimension_semantics = [#tpu.dimension_semantics<parallel>, #tpu.dimension_semantics<parallel>, #tpu.dimension_semantics<parallel>], iteration_bounds = array<i64: 2, 4, 1>, scalar_prefetch = 0 : i64, scratch_operands = 0 : i64, tpu.core_type = #tpu.core_type<tc>, window_params = [{transform_indices = @transform_0, window_bounds = array<i64: 1, 1, 8, 8>}, {transform_indices = @transform_1, window_bounds = array<i64: 1, 1, 8, 8>}, {transform_indices = @transform_2, window_bounds = array<i64: 1, 1, 8, 8>}, {transform_indices = @transform_3, window_bounds = array<i64: 1, 1, 8, 8>}]} {
    %c0 = arith.constant 0 : index
    %c0_0 = arith.constant 0 : index
    %c0_1 = arith.constant 0 : index
    %c0_2 = arith.constant 0 : index
    %0 = vector.load %arg3[%c0, %c0_0, %c0_1, %c0_2] : memref<1x1x8x8xbf16, #tpu.memory_space<vmem>>, vector<1x1x8x8xbf16>
    %1 = vector.shape_cast %0 : vector<1x1x8x8xbf16> to vector<8x8xbf16>
    %cst = arith.constant 0xFF800000 : f32
    %2 = vector.broadcast %cst : f32 to vector<8x1xf32>
    %cst_3 = arith.constant 0.000000e+00 : f32
    %3 = vector.broadcast %cst_3 : f32 to vector<8x1xf32>
    %cst_4 = arith.constant 0.000000e+00 : f32
    %4 = vector.broadcast %cst_4 : f32 to vector<8x8xf32>
    %c0_i32 = arith.constant 0 : i32
    %c8_i32 = arith.constant 8 : i32
    %5 = arith.muli %c0_i32, %c8_i32 : i32
    %6 = tpu.assume_multiple %5, 8 : i32
    %c0_5 = arith.constant 0 : index
    %c0_6 = arith.constant 0 : index
    %7 = arith.index_cast %6 : i32 to index
    %c0_7 = arith.constant 0 : index
    %8 = vector.load %arg4[%c0_5, %c0_6, %7, %c0_7] : memref<1x1x8x8xbf16, #tpu.memory_space<vmem>>, vector<1x1x8x8xbf16>
    %9 = vector.shape_cast %8 : vector<1x1x8x8xbf16> to vector<8x8xbf16>
    %c0_8 = arith.constant 0 : index
    %c0_9 = arith.constant 0 : index
    %10 = arith.index_cast %6 : i32 to index
    %c0_10 = arith.constant 0 : index
    %11 = vector.load %arg5[%c0_8, %c0_9, %10, %c0_10] : memref<1x1x8x8xbf16, #tpu.memory_space<vmem>>, vector<1x1x8x8xbf16>
    %12 = vector.shape_cast %11 : vector<1x1x8x8xbf16> to vector<8x8xbf16>
    %cst_11 = arith.constant dense<0.000000e+00> : vector<8x8xf32>
    %13 = tpu.matmul %1, %9, %cst_11 {dimension_numbers = #tpu.dot_dimension_numbers<[1], [1], [0], [0], [0, 0, 1, 0], [], []>} : vector<8x8xbf16>, vector<8x8xbf16>, vector<8x8xf32> -> vector<8x8xf32>
    %cst_12 = arith.constant dense<0xFF800000> : vector<8xf32>
    %14 = vector.multi_reduction <maximumf>, %13, %cst_12 [1] : vector<8x8xf32> to vector<8xf32>
    %15 = vector.shape_cast %14 : vector<8xf32> to vector<8x1xf32>
    %16 = arith.maximumf %2, %15 : vector<8x1xf32>
    %17 = arith.subf %2, %16 : vector<8x1xf32>
    %18 = math.exp %17 : vector<8x1xf32>
    %19 = vector.broadcast %16 : vector<8x1xf32> to vector<8x8xf32>
    %20 = arith.subf %13, %19 : vector<8x8xf32>
    %21 = math.exp %20 : vector<8x8xf32>
    %22 = arith.mulf %18, %3 : vector<8x1xf32>
    %cst_13 = arith.constant dense<0.000000e+00> : vector<8xf32>
    %23 = vector.multi_reduction <add>, %21, %cst_13 [1] : vector<8x8xf32> to vector<8xf32>
    %24 = vector.shape_cast %23 : vector<8xf32> to vector<8x1xf32>
    %25 = arith.addf %22, %24 : vector<8x1xf32>
    %26 = vector.broadcast %18 : vector<8x1xf32> to vector<8x8xf32>
    %27 = arith.mulf %26, %4 : vector<8x8xf32>
    %28 = arith.truncf %21 : vector<8x8xf32> to vector<8x8xbf16>
    %cst_14 = arith.constant dense<0.000000e+00> : vector<8x8xf32>
    %29 = tpu.matmul %28, %12, %cst_14 {dimension_numbers = #tpu.dot_dimension_numbers<[1], [0], [0], [1], [0, 0, 1, 1], [], []>} : vector<8x8xbf16>, vector<8x8xbf16>, vector<8x8xf32> -> vector<8x8xf32>
    %30 = arith.addf %27, %29 : vector<8x8xf32>
    %c1_i32 = arith.constant 1 : i32
    %31 = tpu.reciprocal %25 {approx = true} : vector<8x1xf32> -> vector<8x1xf32>
    %32 = vector.broadcast %31 : vector<8x1xf32> to vector<8x8xf32>
    %33 = arith.mulf %30, %32 : vector<8x8xf32>
    %34 = arith.truncf %33 : vector<8x8xf32> to vector<8x8xbf16>
    %c0_15 = arith.constant 0 : index
    %c0_16 = arith.constant 0 : index
    %c0_17 = arith.constant 0 : index
    %c0_18 = arith.constant 0 : index
    %35 = vector.load %arg6[%c0_15, %c0_16, %c0_17, %c0_18] : memref<1x1x8x8xbf16, #tpu.memory_space<vmem>>, vector<1x1x8x8xbf16>
    %36 = vector.shape_cast %35 : vector<1x1x8x8xbf16> to vector<8x8xbf16>
    %37 = vector.shape_cast %34 : vector<8x8xbf16> to vector<1x1x8x8xbf16>
    tpu.vector_store %arg6[%c0_15, %c0_16, %c0_17, %c0_18], %37 {strides = array<i32>} : memref<1x1x8x8xbf16, #tpu.memory_space<vmem>>, vector<1x1x8x8xbf16>,
    return
  }
  func.func @transform_0(%arg0: i32, %arg1: i32, %arg2: i32) -> (i32, i32, i32, i32) {
    %c0_i32 = arith.constant 0 : i32
    %c0_i32_0 = arith.constant 0 : i32
    return %arg1, %arg0, %arg2, %c0_i32 : i32, i32, i32, i32
  }
  func.func @transform_1(%arg0: i32, %arg1: i32, %arg2: i32) -> (i32, i32, i32, i32) {
    %c0_i32 = arith.constant 0 : i32
    %c0_i32_0 = arith.constant 0 : i32
    %c0_i32_1 = arith.constant 0 : i32
    return %arg1, %arg0, %c0_i32, %c0_i32_0 : i32, i32, i32, i32
  }
  func.func @transform_2(%arg0: i32, %arg1: i32, %arg2: i32) -> (i32, i32, i32, i32) {
    %c0_i32 = arith.constant 0 : i32
    %c0_i32_0 = arith.constant 0 : i32
    %c0_i32_1 = arith.constant 0 : i32
    return %arg1, %arg0, %c0_i32, %c0_i32_0 : i32, i32, i32, i32
  }
  func.func @transform_3(%arg0: i32, %arg1: i32, %arg2: i32) -> (i32, i32, i32, i32) {
    %c0_i32 = arith.constant 0 : i32
    %c0_i32_0 = arith.constant 0 : i32
    return %arg1, %arg0, %arg2, %c0_i32 : i32, i32, i32, i32
  }
}

</mosaic_0001>

<bundles_post_ra>
// kernel: _lambda_.5
= control target key start
LH: loop header
LB: loop body
LE: loop exit
PB: predicated region body
PF: predicated region fallthrough
CT: control target
= control target key end

     0   :  { %s579_s12 = smov 0   ;;  %s581_s13 = smov 0   ;;  %s625_s0 = inlined_call_operand.vmem [shape: f32[16,16], index: 0, kind: input, shape index: {}]   ;;  %s626_s1 = inlined_call_operand.vmem [shape: bf16[4,16,8], index: 1, kind: input, shape index: {}]   ;;  %s627_s2 = inlined_call_operand.vmem [shape: f32[4,1,8], index: 2, kind: input, shape index: {}]   ;;  %s628_s3 = inlined_call_operand.vmem [shape: bf16[4,16,8], index: 3, kind: output, shape index: {}]  }
   0x1   :  { %s583_s14 = smov 0  }
   0x2 LB: > { %s28_s15 = sadd.s32 1, %s551_s13  ;;  %p482_p0 = scmp.ge.s32.totalorder %s555_s14, 1  ;;  %s555_s14 = sphi %s583_s14, %s13_s14   ;;  %s551_s13 = sphi %s581_s13, %s630_s13   ;;  %s547_s12 = sphi %s579_s12, %s629_s12  }
   0x3   : > { %p30_p1 = scmp.ge.s32.totalorder %s28_s15, 4  ;;  %p189_p2 = scmp.lt.s32.totalorder %s555_s14, 5 }
   0x5   : > { %s632_s15 = smov (%p30_p1, %s28_s15), 0  ;;  %p190_p3 = pnand %p482_p0, %p189_p2 }
   0x6   : > { %vm269_vm0 = vcmask (!%p190_p3), 64512   ;;  %p242_p4 = scmp.lt.s32.totalorder (!%p190_p3), %s547_s12, 3  ;;  %v557_v0 = vmov (!%p190_p3), 0.0   ;;  %vm558_vm1 = vmmov (!%p190_p3), 0   ;;  %v272_v1 = vld [vmem:[%s625_s0] sm:$0xff] (!%p190_p3)  ;;  %v273_v2 = vld [vmem:[%s625_s0 + $0x8] sm:$0xff] (!%p190_p3) }
   0x7   : > { %193 = sbr.rel (%p190_p3) target bundleno = 250 (0xfa), region = 32  ;;  %270 = vst.msk [vmem:[#allocation2] sm:$0xff] (!%p190_p3), %vm269_vm0, %v557_v0  ;;  %271 = vst.msk [vmem:[#allocation2 + $0x8] sm:$0xff] (!%p190_p3), %vm269_vm0, %v557_v0  ;;  %500 = vmatprep.subr.bf16.mxu0 (!%p190_p3), %v557_v0  ;;  %502 = vmatprep.mubr.msk.bf16.mxu0 (!%p190_p3), %vm558_vm1, %v557_v0  ;;  %v274_v4 = vpack.c.bf16 (!%p190_p3), %v273_v2, %v272_v1  ;;  %vm285_vm2 = vcmask (!%p190_p3), 130048   ;;  %vm357_vm3 = vcmask (!%p190_p3), 60416  }
   0xe   : > { %s634_s12 = smov (!%p242_p4, %s547_s12), 3  ;;  %v275_v5 = vld [vmem:[#allocation2] sm:$0xff]  ;;  %v276_v7 = vld [vmem:[#allocation2 + $0x8] sm:$0xff] }
   0xf   : > { %s494_s16 = sshll.u32 %s634_s12, 3  ;;  %s253_s26 = scalar_lea.vmem %s627_s2, %s634_s12 }
  0x10   : > { %s249_s23 = scalar_lea.vmem %s626_s1, %s494_s16  ;;  %v489_v13 = vld [vmem:[%s253_s26] ss:$0 sm:$0xff]  ;;  %s262_s29 = scalar_lea.vmem %s628_s3, %s494_s16 }
  0x11   : > { %v532_v3 = vld [vmem:[%s249_s23] sm:$0xff]  }
  0x12   : > { %501 = vmatpush3.bf16.msra.mxu0 %v532_v3 }
  0x15   : > { %503 = vmatmul.mubr.msk.bf16.vlgmr.msra.gmra.mrb[0].mxu0 %vm285_vm2, %v274_v4 }
  0xe8   : > { %v323_v6 = vpop.f32.mrb[0].mxu0 }
  0xe9   : > { %v330_v8 = vadd.f32 %v323_v6, %v275_v5  ;;  %v504_v9 = vpop.f32.mrb[1].mxu0 }
  0xea   : > { %v326_v10 = vpop.f32.mrb[2].mxu0 }
  0xeb   : > { %333 = vst.msk [vmem:[#allocation2] sm:$0xff] %vm269_vm0, %v330_v8  ;;  %v331_v11 = vadd.f32 %v326_v10, %v276_v7  ;;  %v505_v12 = vpop.f32.mrb[3].mxu0 }
  0xed   : > { %334 = vst.msk [vmem:[#allocation2 + $0x8] sm:$0xff] %vm269_vm0, %v331_v11 }
  0xf2   : > { %v338_v14 = vld [vmem:[#allocation2] sm:$0xff] }
  0xf3   : > { %v347_v15 = vadd.f32 %v489_v13, %v338_v14 }
  0xf4   : > { %v339_v16 = vld [vmem:[#allocation2 + $0x8] sm:$0xff] }
  0xf5   : > { %v496_v17 = vpack.c.bf16 %v347_v15, %v347_v15  ;;  %v348_v18 = vadd.f32 %v489_v13, %v339_v16 }
  0xf7   : > { %358 = vst.msk [vmem:[%s262_s29] sm:$0xf] %vm357_vm3, %v496_v17  ;;  %v497_v19 = vpack.c.bf16 %v348_v18, %v348_v18 }
  0xf9   : > { %359 = vst.msk [vmem:[%s262_s29 + $0x4] sm:$0xf] %vm357_vm3, %v497_v19 }
  0xfa PF: > { %s13_s14 = sadd.s32 1, %s555_s14   ;;  %s629_s12 = smov %s551_s13 }
  0xfb   : > { %p10_p5 = scmp.ge.s32.totalorder %s13_s14, 6   ;;  %s630_s13 = smov %s632_s15 }
  0xfd   :  { %12 = sbr.rel (!%p10_p5) target bundleno = 2 (0x2), region = 76 }

// kernel: _lambda_.9
= control target key start
LH: loop header
LB: loop body
LE: loop exit
PB: predicated region body
PF: predicated region fallthrough
CT: control target
= control target key end

     0   :  { %8 = vsyncpa [#allocation4], 0  ;;  %s575_s12 = smov 0   ;;  %s577_s13 = smov 0   ;;  %s650_s0 = inlined_call_operand.vmem [shape: bf16[4,16,8], index: 0, kind: input, shape index: {}]   ;;  %s651_s1 = inlined_call_operand.vmem [shape: bf16[4,8,32], index: 1, kind: input, shape index: {}]   ;;  %s652_s2 = inlined_call_operand.vmem [shape: f32[1,32], index: 2, kind: input, shape index: {}]   ;;  %s653_s3 = inlined_call_operand.hbm [shape: f32[16,32], index: 3, kind: output, shape index: {}]  }
   0x1   :  { %s579_s14 = smov 0  }
   0x2 LB: > { %s432_s15 = sadd.s32 4294967295, %s547_s14   ;;  %s26_s16 = sadd.s32 1, %s543_s13  ;;  %s547_s14 = sphi %s579_s14, %s14_s14   ;;  %s543_s13 = sphi %s577_s13, %s656_s13   ;;  %s539_s12 = sphi %s575_s12, %s655_s12  }
   0x3   : > { %p27_p0 = scmp.ge.s32.totalorder %s26_s16, 4  ;;  %p436_p1 = scmp.ge.s32.totalorder %s547_s14, 1 }
   0x4   : > { %p188_p2 = scmp.lt.s32.totalorder %s547_s14, 5 }
   0x5   : > { %s658_s16 = smov (%p27_p0, %s26_s16), 0 }
   0x6   : > { %p189_p3 = pnand %p436_p1, %p188_p2 }
   0x7   : > { %p222_p4 = scmp.lt.s32.totalorder (!%p189_p3), %s539_s12, 3  ;;  %p440_p5 = scmp.ne.s32.totalorder (!%p189_p3), %s539_s12, 0 }
   0x8   : > { %192 = sbr.rel (%p189_p3) target bundleno = 281 (0x119), region = 32 }
   0xf   : > { %s223_s17 = scalar_select %p222_p4, %s539_s12, 3 }
  0x10   : > { %246 = sbr.rel (%p440_p5) target bundleno = 23 (0x17), region = 36  ;;  %vm247_vm0 = vcmask (!%p440_p5), 261120   ;;  %v549_v0 = vmov (!%p440_p5), 0.0  }
  0x11   : > { %s449_s18 = sshll.u32 %s223_s17, 3  ;;  %s439_s19 = sshll.u32 %s223_s17, 2  ;;  %248 = vst.msk [vmem:[#allocation2] sm:$0xff] (!%p440_p5), %vm247_vm0, %v549_v0  ;;  %249 = vst.msk [vmem:[#allocation2 + $0x8] sm:$0xff] (!%p440_p5), %vm247_vm0, %v549_v0 }
  0x12   : > { %s229_s22 = scalar_lea.vmem %s650_s0, %s449_s18  ;;  %s237_s25 = scalar_lea.vmem %s651_s1, %s439_s19 }
  0x17 PF: > { %v254_v1 = vld [vmem:[%s237_s25] sm:$0xf]  ;;  %vm264_vm1 = vcmask 1043456   ;;  %v550_v2 = vmov 0.0   ;;  %vm551_vm2 = vmmov 0   ;;  %vm260_vm3 = vcmask 64512  }
  0x18   : > { %452 = vmatprep.subr.bf16.mxu0 %v550_v2  ;;  %v266_v3 = vsel %vm264_vm1, %v254_v1, 0  ;;  %454 = vmatprep.mubr.msk.bf16.mxu0 %vm551_vm2, %v550_v2  ;;  %v494_v4 = vld [vmem:[%s229_s22] sm:$0xff]   ;;  %vm311_vm4 = vcmask 261120   ;;  %v251_v7 = vld [vmem:[#allocation2 + $0x8] sm:$0xff]  ;;  %p443_p6 = scmp.ne.s32.totalorder %s539_s12, 3 }
  0x19   : > { %453 = vmatpush3.bf16.msra.mxu0 %v266_v3  ;;  %v250_v5 = vld [vmem:[#allocation2] sm:$0xff] }
  0x1a   : > { %v444_v14 = vld [vmem:[%s652_s2] ss:$0 sm:$0xff] (!%p443_p6) }
  0x1c   : > { %455 = vmatmul.mubr.msk.bf16.vlgmr.msra.gmra.mrb[0].mxu0 %vm260_vm3, %v494_v4 }
  0xee   : > { %317 = sbr.rel (%p443_p6) target bundleno = 255 (0xff), region = 40 }
  0xef   : > { %v302_v6 = vpop.f32.mrb[0].mxu0 }
  0xf0   : > { %v309_v8 = vadd.f32 %v302_v6, %v250_v5  ;;  %v456_v9 = vpop.f32.mrb[1].mxu0 }
  0xf1   : > { %v305_v10 = vpop.f32.mrb[2].mxu0 }
  0xf2   : > { %312 = vst.msk [vmem:[#allocation2] sm:$0xff] %vm311_vm4, %v309_v8  ;;  %v310_v11 = vadd.f32 %v305_v10, %v251_v7  ;;  %v457_v12 = vpop.f32.mrb[3].mxu0 }
  0xf4   : > { %313 = vst.msk [vmem:[#allocation2 + $0x8] sm:$0xff] %vm311_vm4, %v310_v11 }
  0xf9   : > { %v318_v13 = vld [vmem:[#allocation2] sm:$0xff] }
  0xfa   : > { %v327_v16 = vadd.f32 %v444_v14, %v318_v13 }
  0xfb   : > { %v319_v15 = vld [vmem:[#allocation2 + $0x8] sm:$0xff] }
  0xfc   : > { %v328_v17 = vadd.f32 %v444_v14, %v319_v15  ;;  %329 = vst.msk [vmem:[#allocation3] sm:$0xff] %vm311_vm4, %v327_v16 }
  0xfe   : > { %330 = vst.msk [vmem:[#allocation3 + $0x8] sm:$0xff] %vm311_vm4, %v328_v17 }
  0xff PF: > { %p615_p7 = scmp.eq.s32.totalorder %s432_s15, 3  ;;  %s552_s29 = smov [#allocation3]  }
 0x100   : > { %s341_s30 = sshll.u32 %s552_s29, 4  ;;  %s342_s30 = int_to_ptr.vmem [resolvable:$true] %s341_s30 }
 0x101   : > { %s495_s4 = scalar_lea.vmem %s342_s30, 256  ;;  %p502_p11 = scmp.lt.s32.totalorder %s342_s30, %s342_s30 }
 0x102   : > { %p496_p8 = scmp.ne.s32.totalorder %s342_s30, %s495_s4  ;;  %p503_p12 = scmp.lt.s32.totalorder %s495_s4, %s495_s4 }
 0x104   : > { %p497_p9 = pnand %p496_p8, %p615_p7  ;;  %p504_p13 = por %p503_p12, %p502_p11 }
 0x106   : > { %p498_p10 = pneg %p497_p9 }
 0x108   : > { %p505_p0 = pnand %p504_p13, %p498_p10 }
 0x10a   : > { %508 = shalt.err (!%p505_p0)
}
 0x10b   : > { %s509_s7 = scalar_lea.hbm %s653_s3, 256 }
 0x10c   : > { %p510_p1 = scmp.ne.s32.totalorder %s653_s3, %s509_s7  ;;  %p515_p4 = scmp.lt.u32.totalorder %s509_s7, %s653_s3 }
 0x10e   : > { %p511_p2 = pnand %p510_p1, %p615_p7 }
 0x110   : > { %p512_p3 = pneg %p511_p2 }
 0x112   : > { %p517_p5 = pnand %p515_p4, %p512_p3 }
 0x114   : > { %520 = shalt.err (!%p517_p5)
}
 0x115   : > { %s553_s12 = smov 128   ;;  %s554_s15 = smov 8  }
 0x116   : > { %459 = dma.vmem_to_hbm [thread:$0]  (%p615_p7), %s342_s30, 256, %s653_s3, [#allocation4], %s553_s12, %s553_s12, %s554_s15  }
 0x117   : > { %534 = dma.done.wait (%p615_p7), [#allocation4], 256  }
 0x118   : > { %536 = vsyncadd (%p615_p7), [#allocation4], 4294967040 }
 0x119 PF: > { %s14_s14 = sadd.s32 1, %s547_s14   ;;  %s655_s12 = smov %s543_s13 }
 0x11a   : > { %p11_p6 = scmp.ge.s32.totalorder %s14_s14, 6   ;;  %s656_s13 = smov %s658_s16 }
 0x11c   :  { %13 = sbr.rel (!%p11_p6) target bundleno = 2 (0x2), region = 74 }
 0x123   :  { %357 = vsyncpa [#allocation4], 1 }
 0x124   :  { %359 = vsyncpa [#allocation4 + $0x1], 1 }

// kernel: _lambda_.8
= control target key start
LH: loop header
LB: loop body
LE: loop exit
PB: predicated region body
PF: predicated region fallthrough
CT: control target
= control target key end

     0   :  { %s690_s12 = smov 0   ;;  %s692_s13 = smov 0   ;;  %s758_s0 = inlined_call_operand.vmem [shape: bf16[4,2,8,8], index: 0, kind: input, shape index: {}]   ;;  %s759_s1 = inlined_call_operand.vmem [shape: bf16[4,2,8,8], index: 1, kind: input, shape index: {}]   ;;  %s760_s2 = inlined_call_operand.vmem [shape: bf16[4,2,8,8], index: 2, kind: input, shape index: {}]   ;;  %s761_s3 = inlined_call_operand.vmem [shape: bf16[4,2,8,8], index: 3, kind: output, shape index: {}]  }
   0x1   :  { %s694_s14 = smov 0   ;;  %s696_s15 = smov 0  }
   0x2   :  { %s698_s16 = smov 0  }
   0x3 LB: > { %s28_s17 = sadd.s32 1, %s658_s14  ;;  %s32_s18 = sadd.s32 1, %s662_s15  ;;  %s666_s16 = sphi %s698_s16, %s13_s16   ;;  %s662_s15 = sphi %s696_s15, %s765_s15   ;;  %s658_s14 = sphi %s694_s14, %s764_s14   ;;  %s654_s13 = sphi %s692_s13, %s763_s13   ;;  %s650_s12 = sphi %s690_s12, %s762_s12  }
   0x4   : > { %p30_p0 = scmp.ge.s32.totalorder %s28_s17, 4  ;;  %p551_p1 = scmp.ge.s32.totalorder %s666_s16, 1 }
   0x5   : > { %p200_p2 = scmp.lt.s32.totalorder %s666_s16, 9 }
   0x6   : > { %s767_s17 = smov (%p30_p0, %s28_s17), 0  ;;  %s769_s18 = smov (!%p30_p0, %s32_s18), %s662_s15 }
   0x7   : > { %p201_p3 = pnand %p551_p1, %p200_p2  ;;  %p34_p4 = scmp.ge.s32.totalorder %s769_s18, 2 }
   0x8   : > { %p252_p5 = scmp.lt.s32.totalorder (!%p201_p3), %s650_s12, 3  ;;  %p254_p6 = scmp.lt.s32.totalorder (!%p201_p3), %s654_s13, 1  ;;  %v668_v0 = vmov (!%p201_p3), 0.0   ;;  %vm669_vm0 = vmmov (!%p201_p3), 0   ;;  %vm294_vm1 = vcmask (!%p201_p3), 64512   ;;  %vm359_vm2 = vcmask (!%p201_p3), 1043456  }
   0x9   : > { %s771_s18 = smov (%p34_p4, %s769_s18), 0  ;;  %204 = sbr.rel (%p201_p3) target bundleno = 621 (0x26d), region = 32 }
   0xa   : > { %568 = vmatprep.subr.bf16.mxu0 (!%p201_p3), %v668_v0  ;;  %570 = vmatprep.mubr.msk.bf16.mxu0 (!%p201_p3), %vm669_vm0, %v668_v0  ;;  %vm407_vm3 = vcmask (!%p201_p3), 60416  }
   0xb   : > { %574 = vmatprep.subr.bf16.mxu1 (!%p201_p3), %v668_v0  ;;  %576 = vmatprep.mubr.msk.bf16.mxu1 (!%p201_p3), %vm669_vm0, %v668_v0 }
  0x10   : > { %s773_s12 = smov (!%p252_p5, %s650_s12), 3  ;;  %s775_s13 = smov (!%p254_p6, %s654_s13), 1 }
  0x11   : > { %s552_s19 = sshll.u32 %s773_s12, 1 }
  0x12   : > { %s260_s20 = sadd.s32 %s552_s19, %s775_s13 }
  0x13   : > { %s720_s21 = sshll.u32 %s260_s20, 2 }
  0x14   : > { %s270_s24 = scalar_lea.vmem %s759_s1, %s720_s21  ;;  %s262_s27 = scalar_lea.vmem %s758_s0, %s720_s21 }
  0x15   : > { %v292_v1 = vld [vmem:[%s270_s24] sm:$0xf]  ;;  %s278_s30 = scalar_lea.vmem %s760_s2, %s720_s21  ;;  %s289_s6 = scalar_lea.vmem %s761_s3, %s720_s21 }
  0x16   : > { %v299_v2 = vsel %vm294_vm1, %v292_v1, 0  ;;  %v291_v3 = vld [vmem:[%s262_s27] sm:$0xf] }
  0x17   : > { %569 = vmatpush3.bf16.xpose.msra.mxu0 %v299_v2  ;;  %v293_v9 = vld [vmem:[%s278_s30] sm:$0xf] }
  0x18   : > { %v361_v10 = vsel %vm359_vm2, %v293_v9, 0 }
  0x19   : > { %575 = vmatpush3.bf16.msra.mxu1 %v361_v10 }
  0x1e   : > { %571 = vmatmul.mubr.msk.bf16.vlgmr.msra.gmra.mrb[0].mxu0 %vm294_vm1, %v291_v3 }
  0xf1   : > { %v335_v4 = vpop.f32.mrb[0].mxu0 }
  0xf2   : > { %v572_v5 = vpop.f32.mrb[1].mxu0  ;;  %v341_v6 = vsel %vm294_vm1, %v335_v4, -inf }
  0xf3   : > { %342 = vmax.xlane.f32.xlu0 %v341_v6  ;;  %v338_v7 = vpop.f32.mrb[2].mxu0 }
  0xf4   : > { %v573_v8 = vpop.f32.mrb[3].mxu0 }
 0x180   : > { %v343_v11 = vpop.xlane.xlu0 %342 }
 0x181   : > { %v347_v12 = vsub.f32 %v335_v4, %v343_v11  ;;  %v344_v17 = vsub.f32 -inf, %v343_v11 }
 0x183   : > { %v348_v13 = vmul.f32 1.442695, %v347_v12  ;;  %v345_v18 = vmul.f32 1.442695, %v344_v17 }
 0x185   : > { %622 = vpow2.f32 %v348_v13 }
 0x186   : > { %624 = vpow2.f32 %v345_v18 }
 0x18f   : > { %v623_v14 = vpop.eup %622 }
 0x190   : > { %v351_v15 = vsel %vm294_vm1, %v623_v14, 0.0  ;;  %v355_v16 = vpack.c.bf16 %v623_v14, %v623_v14  ;;  %v625_v19 = vpop.eup %624 }
 0x191   : > { %352 = vadd.xlane.f32.xlu0 %v351_v15  ;;  %v350_v21 = vmul.f32 0.0, %v625_v19 }
 0x192   : > { %577 = vmatmul.mubr.msk.bf16.vlgmr.msra.gmra.mrb[0].mxu1 %vm294_vm1, %v355_v16 }
 0x21e   : > { %v353_v20 = vpop.xlane.xlu0 %352 }
 0x21f   : > { %v354_v22 = vadd.f32 %v353_v20, %v350_v21 }
 0x221   : > { %626 = vrcp.f32 %v354_v22 }
 0x22b   : > { %v627_v26 = vpop.eup %626 }
 0x265   : > { %v397_v23 = vpop.f32.mrb[0].mxu1 }
 0x266   : > { %v403_v24 = vadd.f32 %v397_v23, %v350_v21  ;;  %v578_v25 = vpop.f32.mrb[1].mxu1 }
 0x267   : > { %v400_v27 = vpop.f32.mrb[2].mxu1 }
 0x268   : > { %v405_v28 = vmul.f32 %v627_v26, %v403_v24  ;;  %v579_v29 = vpop.f32.mrb[3].mxu1 }
 0x26a   : > { %v406_v30 = vpack.c.bf16 %v405_v28, %v405_v28 }
 0x26c   : > { %408 = vst.msk [vmem:[%s289_s6] sm:$0xf] %vm407_vm3, %v406_v30 }
 0x26d PF: > { %s13_s16 = sadd.s32 1, %s666_s16   ;;  %s762_s12 = smov %s658_s14 }
 0x26e   : > { %p10_p7 = scmp.ge.s32.totalorder %s13_s16, 10   ;;  %s763_s13 = smov %s662_s15 }
 0x26f   : > { %s764_s14 = smov %s767_s17  ;;  %s765_s15 = smov %s771_s18 }
 0x270   :  { %12 = sbr.rel (!%p10_p7) target bundleno = 3 (0x3), region = 68 }

</bundles_post_ra>
